<compile_context>
chip_gen: v6e
topology: v6e:2x2x1
jax: 0.10.0
libtpu: 0.0.40
codegen_flags: <defaults>
</compile_context>

<pallas_src>
import functools

import jax
import jax.numpy as jnp
from jax.experimental import pallas as pl
from jax.experimental.pallas import tpu as pltpu


def _round_up(x, m):
    return (x + m - 1) // m * m


def _divisor_col_tiles(H):
    """Lane-dense (128-multiple) column tiles that divide H, largest first."""
    cands = [t for t in range((H // 128) * 128, 0, -128) if H % t == 0]
    return cands or [H]


def _vmem_capacity_bytes():
    try:
        return int(pltpu.get_tpu_info().vmem_capacity_bytes)
    except Exception:
        return 64 * 1024 * 1024  # conservative (v7x per-TC) fallback


def fold_prenorm_linear_params(gamma, beta, w, wb):
    """Fold the LayerNorm affine into the Linear layer (parameters are static):
         (xn * g + b) @ W + wb  ==  xn @ (g[:, None] * W) + (b @ W + wb)
    Call ONCE at parameter-load time, not per forward call."""
    D, H = w.shape
    gf = gamma.reshape(D).astype(jnp.float32)
    bf = beta.reshape(D).astype(jnp.float32)
    wf32 = w.astype(jnp.float32)
    w_fold = (wf32 * gf[:, None]).astype(w.dtype)
    # Folded bias stays in f32: it is only (1, H) and the kernel adds it in f32.
    wb_fold = wb.reshape(1, H).astype(jnp.float32) + bf[None, :] @ wf32
    return w_fold, wb_fold


def prenorm_linear_kernel(x_ref, w_ref, wb_ref, o_ref, xn_ref, *, eps):
    # Grid: (row tile i [parallel], column tile j [arbitrary, innermost]).
    # LayerNorm is computed only on the first column step of each row tile and
    # cached in VMEM scratch (MXU operand dtype); later j steps reuse it.
    @pl.when(pl.program_id(1) == 0)
    def _():
        x = x_ref[...].astype(jnp.float32)
        # Two-pass (centered) biased variance == PyTorch LayerNorm semantics.
        mean = jnp.mean(x, axis=-1, keepdims=True)
        xc = x - mean
        var = jnp.mean(xc * xc, axis=-1, keepdims=True)
        xn_ref[...] = (xc * jax.lax.rsqrt(var + eps)).astype(xn_ref.dtype)

    out = jnp.dot(xn_ref[...], w_ref[...], preferred_element_type=jnp.float32)
    out = out + wb_ref[...]                       # folded bias in f32
    o_ref[...] = out.astype(o_ref.dtype)


def prenorm_linear(x, w_fold, wb_fold, *, tile_m=256, tile_n=512, eps=1e-5,
                   mxu_dtype=None):
    """x: (B, N, D). Returns fn(LayerNorm(x)) with fn = Linear(D, H).

    w_fold, wb_fold come from fold_prenorm_linear_params().
    mxu_dtype: optionally force the MXU operand dtype (e.g. jnp.bfloat16 on
    v5e when weights are f32); accumulation is always f32.
    """
    B, N, D = x.shape
    H = w_fold.shape[1]
    M = B * N
    x2 = x.reshape(M, D)

    matmul_dtype = jnp.dtype(mxu_dtype) if mxu_dtype is not None else jnp.dtype(w_fold.dtype)
    w_in = w_fold if jnp.dtype(w_fold.dtype) == matmul_dtype else w_fold.astype(matmul_dtype)
    wb_in = wb_fold.reshape(1, H).astype(jnp.float32)

    x_isz = jnp.dtype(x2.dtype).itemsize
    w_isz = jnp.dtype(w_in.dtype).itemsize
    o_isz = jnp.dtype(x.dtype).itemsize
    mm_isz = matmul_dtype.itemsize

    # Hardware-aware VMEM budget (v7x has only 64 MiB per TensorCore).
    vmem_cap = _vmem_capacity_bytes()
    vmem_budget = vmem_cap - 16 * 1024 * 1024

    # Row tile: multiple of 8, clamped for small token counts; no host-side pad
    # (pl.cdiv grid; Pallas masks the overhanging last block's writes).
    tile_m_eff = min(tile_m, _round_up(M, 8))

    def footprint(tn):
        return (2 * tile_m_eff * D * x_isz          # x tile (double-buffered)
                + 2 * D * tn * w_isz                # weight tile
                + 2 * tn * 4                        # f32 bias tile
                + 2 * tile_m_eff * tn * o_isz       # output tile
                + tile_m_eff * D * mm_isz)          # xn scratch (single buffer)

    # Prefer the VMEM-resident full-H weight (weight DMA'd from HBM once, LN
    # once per row tile). Otherwise fall back to lane-dense column tiles.
    if footprint(H) <= vmem_budget:
        tile_n_eff = H
    else:
        fitting = [t for t in _divisor_col_tiles(H) if footprint(t) <= vmem_budget]
        tile_n_eff = fitting[0] if fitting else _divisor_col_tiles(H)[-1]

    n_i = pl.cdiv(M, tile_m_eff)
    n_j = pl.cdiv(H, tile_n_eff)
    grid = (n_i, n_j)

    vmem_limit = int(min(vmem_cap - 4 * 1024 * 1024,
                         max(32 * 1024 * 1024,
                             footprint(tile_n_eff) + 8 * 1024 * 1024)))

    # Weight is fetched once total in the resident path, once per row tile in
    # the fallback path; x is fetched once per row tile (constant across j).
    weight_sweeps = 1 if n_j == 1 else n_i
    cost = pl.CostEstimate(
        flops=int(2 * M * D * H + 7 * M * D),
        transcendentals=int(M),
        bytes_accessed=int(M * D * x_isz
                           + weight_sweeps * D * H * w_isz
                           + H * 4
                           + M * H * o_isz),
    )

    kernel = functools.partial(prenorm_linear_kernel, eps=eps)
    out2 = pl.pallas_call(
        kernel,
        out_shape=jax.ShapeDtypeStruct((M, H), x.dtype),
        grid_spec=pltpu.PrefetchScalarGridSpec(
            num_scalar_prefetch=0,
            grid=grid,
            in_specs=[
                pl.BlockSpec((tile_m_eff, D), lambda i, j: (i, 0)),       # x rows
                pl.BlockSpec((D, tile_n_eff), lambda i, j: (0, j)),       # folded W
                pl.BlockSpec((1, tile_n_eff), lambda i, j: (0, j)),       # folded bias (f32)
            ],
            out_specs=pl.BlockSpec((tile_m_eff, tile_n_eff), lambda i, j: (i, j)),
            scratch_shapes=[pltpu.VMEM((tile_m_eff, D), matmul_dtype)],   # cached xn
        ),
        compiler_params=pltpu.CompilerParams(
            dimension_semantics=("parallel", "arbitrary"),
            vmem_limit_bytes=vmem_limit),
        cost_estimate=cost,
    )(x2, w_in, wb_in)

    return out2.reshape(B, N, H)


def prenorm_linear_ref(x, gamma, beta, w, wb):
    xf = x.astype(jnp.float32)
    mean = jnp.mean(xf, axis=-1, keepdims=True)
    var = jnp.mean((xf - mean) ** 2, axis=-1, keepdims=True)
    xn = (xf - mean) * jax.lax.rsqrt(var + 1e-5)
    y = xn * gamma.reshape(-1).astype(jnp.float32) + beta.reshape(-1).astype(jnp.float32)
    out = y @ w.astype(jnp.float32) + wb.reshape(1, -1).astype(jnp.float32)
    return out.astype(x.dtype)


if __name__ == "__main__":
    key = jax.random.PRNGKey(0)
    B, N, D, H = 2, 8, 32, 64
    kx, kg, kb, kw, kwb = jax.random.split(key, 5)

    x = jax.random.normal(kx, (B, N, D), dtype=jnp.float32)
    # Non-trivial LayerNorm affine to exercise the gamma/beta fold.
    gamma = 1.0 + 0.1 * jax.random.normal(kg, (D,), dtype=jnp.float32)
    beta = 0.05 * jax.random.normal(kb, (D,), dtype=jnp.float32)
    # Parameters of the wrapped fn (Linear D -> H), stored as (D, H).
    w = 0.02 * jax.random.normal(kw, (D, H), dtype=jnp.float32)
    wb = 0.02 * jax.random.normal(kwb, (1, H), dtype=jnp.float32)

    ref = prenorm_linear_ref(x, gamma, beta, w, wb)

    # f32 path (fold done once, outside the per-call wrapper).
    w_f, wb_f = fold_prenorm_linear_params(gamma, beta, w, wb)
    out = jax.block_until_ready(prenorm_linear(x, w_f, wb_f))
    assert out.shape == (B, N, H)
    assert jnp.allclose(out, ref, atol=1e-4, rtol=1e-4), "f32 mismatch vs reference"

    # bf16 weights/activations path (bf16 MXU operands, f32 accumulation).
    w_bf, wb_bf = fold_prenorm_linear_params(
        gamma, beta, w.astype(jnp.bfloat16), wb.astype(jnp.bfloat16))
    out_bf = jax.block_until_ready(
        prenorm_linear(x.astype(jnp.bfloat16), w_bf, wb_bf))
    err = jnp.max(jnp.abs(out_bf.astype(jnp.float32) - ref.astype(jnp.float32)))
    assert float(err) < 5e-2, f"bf16 mismatch vs reference: {float(err)}"

    # f32 weights with forced bf16 MXU operands (v5e fast path, gated).
    out_mx = jax.block_until_ready(
        prenorm_linear(x, w_f, wb_f, mxu_dtype=jnp.bfloat16))
    err_mx = jnp.max(jnp.abs(out_mx.astype(jnp.float32) - ref.astype(jnp.float32)))
    assert float(err_mx) < 5e-2, f"bf16-MXU mismatch vs reference: {float(err_mx)}"

    print("KERNEL_OK")
</pallas_src>

<mosaic_0001>
module attributes {stable_mosaic.version = 11 : i64} {
  func.func @prenorm_linear_kernel(%arg0: i32, %arg1: i32, %arg2: memref<16x32xf32, #tpu.memory_space<vmem>>, %arg3: memref<32x64xf32, #tpu.memory_space<vmem>>, %arg4: memref<1x64xf32, #tpu.memory_space<vmem>>, %arg5: memref<16x64xf32, #tpu.memory_space<vmem>>, %arg6: memref<16x32xf32, #tpu.memory_space<vmem>>) attributes {dimension_semantics = [#tpu.dimension_semantics<parallel>, #tpu.dimension_semantics<arbitrary>], iteration_bounds = array<i64: 1, 1>, scalar_prefetch = 0 : i64, scratch_operands = 1 : i64, tpu.core_type = #tpu.core_type<tc>, window_params = [{transform_indices = @transform_0, window_bounds = array<i64: 16, 32>}, {transform_indices = @transform_1, window_bounds = array<i64: 32, 64>}, {transform_indices = @transform_2, window_bounds = array<i64: 1, 64>}, {transform_indices = @transform_3, window_bounds = array<i64: 16, 64>}]} {
    %c0_i32 = arith.constant 0 : i32
    %0 = arith.cmpi eq, %arg1, %c0_i32 : i32
    %1 = arith.extui %0 : i1 to i32
    %c0_i32_0 = arith.constant 0 : i32
    %2 = arith.cmpi ne, %1, %c0_i32_0 : i32
    scf.if %2 {
      %c0_8 = arith.constant 0 : index
      %c0_9 = arith.constant 0 : index
      %10 = vector.load %arg2[%c0_8, %c0_9] : memref<16x32xf32, #tpu.memory_space<vmem>>, vector<16x32xf32>
      %cst_10 = arith.constant dense<0.000000e+00> : vector<16xf32>
      %11 = vector.multi_reduction <add>, %10, %cst_10 [1] : vector<16x32xf32> to vector<16xf32>
      %12 = vector.shape_cast %11 : vector<16xf32> to vector<16x1xf32>
      %cst_11 = arith.constant 3.200000e+01 : f32
      %13 = vector.broadcast %cst_11 : f32 to vector<16x1xf32>
      %14 = arith.divf %12, %13 : vector<16x1xf32>
      %15 = vector.broadcast %14 : vector<16x1xf32> to vector<16x32xf32>
      %16 = arith.subf %10, %15 : vector<16x32xf32>
      %17 = arith.mulf %16, %16 : vector<16x32xf32>
      %cst_12 = arith.constant dense<0.000000e+00> : vector<16xf32>
      %18 = vector.multi_reduction <add>, %17, %cst_12 [1] : vector<16x32xf32> to vector<16xf32>
      %19 = vector.shape_cast %18 : vector<16xf32> to vector<16x1xf32>
      %cst_13 = arith.constant 3.200000e+01 : f32
      %20 = vector.broadcast %cst_13 : f32 to vector<16x1xf32>
      %21 = arith.divf %19, %20 : vector<16x1xf32>
      %cst_14 = arith.constant 9.99999974E-6 : f32
      %22 = vector.broadcast %cst_14 : f32 to vector<16x1xf32>
      %23 = arith.addf %21, %22 : vector<16x1xf32>
      %24 = math.rsqrt %23 : vector<16x1xf32>
      %25 = vector.broadcast %24 : vector<16x1xf32> to vector<16x32xf32>
      %26 = arith.mulf %16, %25 : vector<16x32xf32>
      %c0_15 = arith.constant 0 : index
      %c0_16 = arith.constant 0 : index
      %27 = vector.load %arg6[%c0_15, %c0_16] : memref<16x32xf32, #tpu.memory_space<vmem>>, vector<16x32xf32>
      tpu.vector_store %arg6[%c0_15, %c0_16], %26 {strides = array<i32>} : memref<16x32xf32, #tpu.memory_space<vmem>>, vector<16x32xf32>,
    } else {
    }
    %c0 = arith.constant 0 : index
    %c0_1 = arith.constant 0 : index
    %3 = vector.load %arg6[%c0, %c0_1] : memref<16x32xf32, #tpu.memory_space<vmem>>, vector<16x32xf32>
    %c0_2 = arith.constant 0 : index
    %c0_3 = arith.constant 0 : index
    %4 = vector.load %arg3[%c0_2, %c0_3] : memref<32x64xf32, #tpu.memory_space<vmem>>, vector<32x64xf32>
    %cst = arith.constant dense<0.000000e+00> : vector<16x64xf32>
    %5 = tpu.matmul %3, %4, %cst {dimension_numbers = #tpu.dot_dimension_numbers<[1], [0], [0], [1], [0, 0, 1, 1], [], []>} : vector<16x32xf32>, vector<32x64xf32>, vector<16x64xf32> -> vector<16x64xf32>
    %c0_4 = arith.constant 0 : index
    %c0_5 = arith.constant 0 : index
    %6 = vector.load %arg4[%c0_4, %c0_5] : memref<1x64xf32, #tpu.memory_space<vmem>>, vector<1x64xf32>
    %7 = vector.broadcast %6 : vector<1x64xf32> to vector<16x64xf32>
    %8 = arith.addf %5, %7 : vector<16x64xf32>
    %c0_6 = arith.constant 0 : index
    %c0_7 = arith.constant 0 : index
    %9 = vector.load %arg5[%c0_6, %c0_7] : memref<16x64xf32, #tpu.memory_space<vmem>>, vector<16x64xf32>
    tpu.vector_store %arg5[%c0_6, %c0_7], %8 {strides = array<i32>} : memref<16x64xf32, #tpu.memory_space<vmem>>, vector<16x64xf32>,
    return
  }
  func.func @transform_0(%arg0: i32, %arg1: i32) -> (i32, i32) {
    %c0_i32 = arith.constant 0 : i32
    %c0_i32_0 = arith.constant 0 : i32
    return %arg0, %c0_i32 : i32, i32
  }
  func.func @transform_1(%arg0: i32, %arg1: i32) -> (i32, i32) {
    %c0_i32 = arith.constant 0 : i32
    %c0_i32_0 = arith.constant 0 : i32
    return %c0_i32, %arg1 : i32, i32
  }
  func.func @transform_2(%arg0: i32, %arg1: i32) -> (i32, i32) {
    %c0_i32 = arith.constant 0 : i32
    %c0_i32_0 = arith.constant 0 : i32
    return %c0_i32, %arg1 : i32, i32
  }
  func.func @transform_3(%arg0: i32, %arg1: i32) -> (i32, i32) {
    %c0_i32 = arith.constant 0 : i32
    return %arg0, %arg1 : i32, i32
  }
}

</mosaic_0001>

<bundles_post_ra>
// kernel: tpu_custom_call.1
= control target key start
LH: loop header
LB: loop body
LE: loop exit
PB: predicated region body
PF: predicated region fallthrough
CT: control target
= control target key end

     0   :  { %8 = vsyncpa [#allocation4], 0  ;;  %s344_s0 = inlined_call_operand.hbm [shape: f32[16,32], index: 0, kind: input, shape index: {}]   ;;  %s345_s1 = inlined_call_operand.hbm [shape: f32[32,64], index: 1, kind: input, shape index: {}]   ;;  %s346_s2 = inlined_call_operand.vmem [shape: f32[1,64], index: 2, kind: input, shape index: {}]   ;;  %s347_s3 = inlined_call_operand.hbm [shape: f32[16,64], index: 3, kind: output, shape index: {}]  }
   0x1   :  { %9 = vsyncpa [#allocation7], 0 }
   0x2   :  { %10 = vsyncpa [#allocation5], 0  ;;  %s290_s12 = smov [#allocation3]  }
   0x3   :  { %s16_s13 = sshll.u32 %s290_s12, 4  ;;  %s17_s13 = int_to_ptr.vmem [resolvable:$true] %s16_s13 }
   0x4   :  { %s232_s14 = scalar_lea.vmem %s17_s13, 256  ;;  %p237_p1 = scmp.lt.s32.totalorder %s17_s13, %s17_s13 }
   0x5   :  { %p233_p0 = scmp.ne.s32.totalorder %s17_s13, %s232_s14  ;;  %p238_p2 = scmp.lt.s32.totalorder %s232_s14, %s232_s14 }
   0x7   :  { %p239_p3 = por %p238_p2, %p237_p1 }
   0x9   :  { %p240_p4 = pnand %p239_p3, %p233_p0 }
   0xb   :  { %243 = shalt.err (!%p240_p4)
}
   0xc   :  { %s291_s15 = smov 128   ;;  %s292_s16 = smov 8  }
   0xd   :  { %22 = dma.hbm_to_vmem [thread:$0]  %s344_s0, 256, %s17_s13, [#allocation4], %s291_s15, %s291_s15, %s292_s16  }
   0xe   :  { %s293_s19 = smov [#allocation6]  }
   0xf   :  { %s28_s20 = sshll.u32 %s293_s19, 4  ;;  %s29_s20 = int_to_ptr.vmem [resolvable:$true] %s28_s20 }
  0x10   :  { %s252_s21 = scalar_lea.vmem %s29_s20, 512  ;;  %p257_p6 = scmp.lt.s32.totalorder %s29_s20, %s29_s20 }
  0x11   :  { %p253_p5 = scmp.ne.s32.totalorder %s29_s20, %s252_s21  ;;  %p258_p7 = scmp.lt.s32.totalorder %s252_s21, %s252_s21 }
  0x13   :  { %p259_p8 = por %p258_p7, %p257_p6 }
  0x15   :  { %p260_p9 = pnand %p259_p8, %p253_p5 }
  0x17   :  { %263 = shalt.err (!%p260_p9)
}
  0x18   :  { %34 = dma.hbm_to_vmem [thread:$0]  %s345_s1, 512, %s29_s20, [#allocation7], %s291_s15, %s291_s15, %s292_s16  }
  0x19   :  { %284 = dma.done.wait [#allocation4], 256  }
  0x1a   :  { %285 = vsyncadd [#allocation4], 4294967040 }
  0x1b   :  { %286 = dma.done.wait [#allocation7], 512  }
  0x1c   :  { %287 = vsyncadd [#allocation7], 4294966784  ;;  %vm49_vm0 = vcmask 261120   ;;  %v47_v0 = vld [vmem:[#allocation3] sm:$0xff]  ;;  %v48_v1 = vld [vmem:[#allocation3 + $0x8] sm:$0xff]  ;;  %vm174_vm1 = vcmask 523264  }
  0x1d   :  { %v50_v2 = vsel %vm49_vm0, %v47_v0, 0.0  ;;  %v53_v3 = vsel %vm49_vm0, %v48_v1, 0.0  ;;  %v84_v14 = vld [vmem:[#allocation6 + $0x18] sm:$0xff]  ;;  %v83_v15 = vld [vmem:[#allocation6 + $0x10] sm:$0xff]  ;;  %v82_v16 = vld [vmem:[#allocation6 + $0x8] sm:$0xff]  ;;  %s294_s24 = smov [#allocation8]  }
  0x1e   :  { %51 = vadd.xlane.f32.xlu0 %v50_v2  ;;  %204 = vmatprep.subr.mxu0 %v84_v14  ;;  %v81_v17 = vld [vmem:[#allocation6] sm:$0xff]  ;;  %s182_s25 = sshll.u32 %s294_s24, 4  ;;  %s183_s25 = int_to_ptr.vmem [resolvable:$true] %s182_s25 }
  0x1f   :  { %205 = vmatpush3.msra.mxu0 %v84_v14  ;;  %v195_v30 = vld [vmem:[%s346_s2] ss:$0 sm:$0xff]  ;;  %s264_s26 = scalar_lea.vmem %s183_s25, 256  ;;  %p269_p11 = scmp.lt.s32.totalorder %s183_s25, %s183_s25 }
  0x20   :  { %206 = vmatprep.subr.mxu0 %v83_v15  ;;  %p265_p10 = scmp.ne.s32.totalorder %s183_s25, %s264_s26  ;;  %p270_p12 = scmp.lt.s32.totalorder %s264_s26, %s264_s26 }
  0x21   :  { %207 = vmatpush3.msra.mxu0 %v83_v15 }
  0x22   :  { %54 = vadd.xlane.f32.xlu0 %v53_v3  ;;  %208 = vmatprep.subr.mxu0 %v82_v16  ;;  %p271_p13 = por %p270_p12, %p269_p11 }
  0x23   :  { %209 = vmatpush3.msra.mxu0 %v82_v16 }
  0x24   :  { %210 = vmatprep.subr.mxu0 %v81_v17  ;;  %p272_p0 = pnand %p271_p13, %p265_p10 }
  0x25   :  { %211 = vmatpush3.msra.mxu0 %v81_v17 }
  0xa7   :  { %v52_v4 = vpop.xlane.xlu0 %51 }
  0xa8   :  { %v57_v5 = vmul.f32 0.03125, %v52_v4 }
  0xaa   :  { %v59_v6 = vsub.f32 %v47_v0, %v57_v5 }
  0xab   :  { %v55_v7 = vpop.xlane.xlu0 %54 }
  0xac   :  { %v58_v8 = vmul.f32 0.03125, %v55_v7  ;;  %v61_v9 = vmul.f32 %v59_v6, %v59_v6 }
  0xae   :  { %v60_v10 = vsub.f32 %v48_v1, %v58_v8  ;;  %v63_v11 = vsel %vm49_vm0, %v61_v9, 0.0 }
  0xaf   :  { %64 = vadd.xlane.f32.xlu1 %v63_v11 }
  0xb0   :  { %v62_v12 = vmul.f32 %v60_v10, %v60_v10 }
  0xb2   :  { %v66_v13 = vsel %vm49_vm0, %v62_v12, 0.0 }
  0xb3   :  { %67 = vadd.xlane.f32.xlu1 %v66_v13 }
 0x138   :  { %v65_v18 = vpop.xlane.xlu1 %64 }
 0x139   :  { %v69_v19 = vmul.f32 0.03125, %v65_v18 }
 0x13b   :  { %v71_v20 = vadd.f32 1e-05, %v69_v19 }
 0x13c   :  { %v68_v21 = vpop.xlane.xlu1 %67 }
 0x13d   :  { %220 = vrsqrt.f32 %v71_v20  ;;  %v70_v22 = vmul.f32 0.03125, %v68_v21 }
 0x13f   :  { %v72_v23 = vadd.f32 1e-05, %v70_v22 }
 0x141   :  { %222 = vrsqrt.f32 %v72_v23 }
 0x14a   :  { %v221_v24 = vpop.eup %220 }
 0x14b   :  { %v75_v25 = vmul.f32 %v221_v24, %v59_v6 }
 0x14d   :  { %77 = vst.msk [vmem:[#allocation2] sm:$0xff] %vm49_vm0, %v75_v25 }
 0x14e   :  { %v223_v26 = vpop.eup %222 }
 0x14f   :  { %v76_v27 = vmul.f32 %v223_v26, %v60_v10 }
 0x151   :  { %78 = vst.msk [vmem:[#allocation2 + $0x8] sm:$0xff] %vm49_vm0, %v76_v27 }
 0x154   :  { %v79_v28 = vld [vmem:[#allocation2] sm:$0xff] }
 0x155   :  { %212 = vmatprep.mubr.msk.f32.mxu0 %vm49_vm0, %v79_v28 }
 0x158   :  { %v80_v29 = vld [vmem:[#allocation2 + $0x8] sm:$0xff] }
 0x159   :  { %213 = vmatmul.mubr.msk.f32.vlgmr.msra.gmra.mxu0 %vm49_vm0, %v80_v29 }
 0x219   :  { %v214_v31 = vpop.f32.mrf.mxu0 }
 0x21a   :  { %v171_v32 = vadd.f32 %v214_v31, %v195_v30 }
 0x21b   :  { %v165_v33 = vpop.f32.mrf.mxu0 }
 0x21c   :  { %v166_v34 = vadd.f32 %v195_v30, %v165_v33  ;;  %176 = vst.msk [vmem:[#allocation8 + $0x8] sm:$0xff] %vm174_vm1, %v171_v32 }
 0x21e   :  { %175 = vst.msk [vmem:[#allocation8] sm:$0xff] %vm174_vm1, %v166_v34 }
 0x21f   :  { %275 = shalt.err (!%p272_p0)
}
 0x220   :  { %188 = dma.vmem_to_hbm [thread:$0]  %s183_s25, 256, %s347_s3, [#allocation5], %s291_s15, %s291_s15, %s292_s16  }
 0x221   :  { %288 = dma.done.wait [#allocation5], 256  }
 0x222   :  { %289 = vsyncadd [#allocation5], 4294967040 }
 0x223   :  { %192 = vsyncpa [#allocation4], 1 }
 0x224   :  { %193 = vsyncpa [#allocation7], 1 }
 0x225   :  { %194 = vsyncpa [#allocation5], 1 }

</bundles_post_ra>
